<compile_context>
chip_gen: v5e
topology: v5e:2x2
jax: 0.10.0
libtpu: 0.0.40
codegen_flags: <defaults>
</compile_context>

<pallas_src>
import functools

import jax
import jax.numpy as jnp
from jax.experimental import pallas as pl
from jax.experimental.pallas import tpu as pltpu


def _round_up(x, m):
    return ((x + m - 1) // m) * m


# ----------------------------------------------------------------------------
# Fused VAE forward kernel (one batch tile per grid step)
# ----------------------------------------------------------------------------
def _vae_fused_kernel(x_ref, enc_w_ref, enc_b_ref, mls_w_ref, mls_b_ref,
                      dec_w_ref, dec_b_ref, eps_ref,
                      out_ref, lat_ref, *, latent_pad):
    # encoder: Linear + ReLU (bf16 MXU inputs, f32 accumulate + f32 epilogue)
    x = x_ref[...]                                              # (TM, Dp) bf16
    h = jnp.dot(x, enc_w_ref[...], preferred_element_type=jnp.float32)
    h = jnp.maximum(h + enc_b_ref[...], 0.0)                    # (TM, E) f32

    # fused mu / log_sigma projection: single [E, 2*LP] matmul
    mls = jnp.dot(h.astype(mls_w_ref.dtype), mls_w_ref[...],
                  preferred_element_type=jnp.float32) + mls_b_ref[...]
    mu = mls[:, :latent_pad]                                    # (TM, LP) f32
    log_sigma = mls[:, latent_pad:]
    sigma = jnp.exp(log_sigma)
    z = mu + eps_ref[...] * sigma                               # (TM, LP) f32

    # decoder: Linear + Sigmoid (K padded to LP=128 -> full-depth contraction)
    y = jnp.dot(z.astype(dec_w_ref.dtype), dec_w_ref[...],
                preferred_element_type=jnp.float32) + dec_b_ref[...]
    out_ref[...] = jax.nn.sigmoid(y).astype(out_ref.dtype)

    # lane-dense packed latent outputs: [ z | mu | sigma ]
    lat_ref[...] = jnp.concatenate([z, mu, sigma], axis=-1).astype(lat_ref.dtype)


# ----------------------------------------------------------------------------
# Parameter setup / packing (plain JAX, done once outside the hot path)
# ----------------------------------------------------------------------------
def _init_linear(key, fan_in, fan_out):
    # PyTorch nn.Linear default: U(-1/sqrt(fan_in), 1/sqrt(fan_in))
    kw, kb = jax.random.split(key)
    bound = 1.0 / jnp.sqrt(jnp.float32(fan_in))
    w = jax.random.uniform(kw, (fan_in, fan_out), jnp.float32, -bound, bound)
    b = jax.random.uniform(kb, (fan_out,), jnp.float32, -bound, bound)
    return w, b


def init_vae_params(key, input_dim, encoder_out_dim, latent_dim):
    k_enc, k_mu, k_ls, k_dec = jax.random.split(key, 4)
    enc_w, enc_b = _init_linear(k_enc, input_dim, encoder_out_dim)
    mu_w, mu_b = _init_linear(k_mu, encoder_out_dim, latent_dim)
    ls_w, ls_b = _init_linear(k_ls, encoder_out_dim, latent_dim)
    dec_w, dec_b = _init_linear(k_dec, latent_dim, input_dim)
    return dict(enc_w=enc_w, enc_b=enc_b, mu_w=mu_w, mu_b=mu_b,
                ls_w=ls_w, ls_b=ls_b, dec_w=dec_w, dec_b=dec_b)


def pack_vae_params(params, *, d_pad, latent_pad, compute_dtype=jnp.bfloat16):
    """Pad / concatenate / cast weights for the fused kernel.

    - enc_w padded on the input-feature axis to d_pad (no-op if already x128).
    - mu_w / ls_w concatenated into one [E, 2*latent_pad] weight (zero-padded
      lanes); biases likewise.  Padded log_sigma lanes -> sigma = exp(0) = 1,
      but their decoder weight rows are zero so they never contribute.
    - dec_w zero-padded to [latent_pad, d_pad] (full-depth MXU contraction).
    Matmul operands are cast to bf16; biases stay f32 (added post-accumulation).
    """
    D, E = params["enc_w"].shape
    L = params["mu_w"].shape[1]

    enc_w = jnp.zeros((d_pad, E), compute_dtype)
    enc_w = enc_w.at[:D, :].set(params["enc_w"].astype(compute_dtype))
    enc_b = params["enc_b"].reshape(1, E).astype(jnp.float32)

    mls_w = jnp.zeros((E, 2 * latent_pad), compute_dtype)
    mls_w = mls_w.at[:, :L].set(params["mu_w"].astype(compute_dtype))
    mls_w = mls_w.at[:, latent_pad:latent_pad + L].set(
        params["ls_w"].astype(compute_dtype))
    mls_b = jnp.zeros((1, 2 * latent_pad), jnp.float32)
    mls_b = mls_b.at[0, :L].set(params["mu_b"])
    mls_b = mls_b.at[0, latent_pad:latent_pad + L].set(params["ls_b"])

    dec_w = jnp.zeros((latent_pad, d_pad), compute_dtype)
    dec_w = dec_w.at[:L, :D].set(params["dec_w"].astype(compute_dtype))
    dec_b = jnp.zeros((1, d_pad), jnp.float32)
    dec_b = dec_b.at[0, :D].set(params["dec_b"])

    return dict(enc_w=enc_w, enc_b=enc_b, mls_w=mls_w, mls_b=mls_b,
                dec_w=dec_w, dec_b=dec_b)


# ----------------------------------------------------------------------------
# Forward wrapper: one fused pallas_call, batch-tiled, parallel grid axis
# ----------------------------------------------------------------------------
def vae_forward(packed, x_nchw, eps, *, input_dim, latent_dim,
                d_pad, latent_pad, tm):
    B = x_nchw.shape[0]
    b_pad = _round_up(B, tm)
    compute_dtype = packed["enc_w"].dtype
    E = packed["enc_w"].shape[1]

    # flatten NCHW -> [B, D], pad batch / feature dims (zero rows & lanes)
    x = x_nchw.reshape(B, -1).astype(jnp.float32)
    x_p = jnp.zeros((b_pad, d_pad), compute_dtype)
    x_p = x_p.at[:B, :input_dim].set(x.astype(compute_dtype))
    eps_p = jnp.zeros((b_pad, latent_pad), jnp.float32)
    eps_p = eps_p.at[:B, :latent_dim].set(eps.astype(jnp.float32))

    out_flat_p, lat_p = pl.pallas_call(
        functools.partial(_vae_fused_kernel, latent_pad=latent_pad),
        out_shape=(
            jax.ShapeDtypeStruct((b_pad, d_pad), jnp.float32),
            jax.ShapeDtypeStruct((b_pad, 3 * latent_pad), jnp.float32),
        ),
        grid=(b_pad // tm,),
        in_specs=[
            pl.BlockSpec((tm, d_pad), lambda i: (i, 0)),              # x tile
            pl.BlockSpec((d_pad, E), lambda i: (0, 0)),               # enc_w
            pl.BlockSpec((1, E), lambda i: (0, 0)),                   # enc_b
            pl.BlockSpec((E, 2 * latent_pad), lambda i: (0, 0)),      # mls_w
            pl.BlockSpec((1, 2 * latent_pad), lambda i: (0, 0)),      # mls_b
            pl.BlockSpec((latent_pad, d_pad), lambda i: (0, 0)),      # dec_w
            pl.BlockSpec((1, d_pad), lambda i: (0, 0)),               # dec_b
            pl.BlockSpec((tm, latent_pad), lambda i: (i, 0)),         # eps tile
        ],
        out_specs=(
            pl.BlockSpec((tm, d_pad), lambda i: (i, 0)),              # output
            pl.BlockSpec((tm, 3 * latent_pad), lambda i: (i, 0)),     # z|mu|sig
        ),
        compiler_params=pltpu.CompilerParams(
            dimension_semantics=("parallel",),
            vmem_limit_bytes=32 * 1024 * 1024,
        ),
    )(x_p, packed["enc_w"], packed["enc_b"], packed["mls_w"], packed["mls_b"],
      packed["dec_w"], packed["dec_b"], eps_p)

    # slice off batch / lane padding; reconstruct original NCHW layout
    output = out_flat_p[:B, :input_dim].reshape(x_nchw.shape)
    z = lat_p[:B, 0:latent_dim]
    z_mean = lat_p[:B, latent_pad:latent_pad + latent_dim]
    z_stddev = lat_p[:B, 2 * latent_pad:2 * latent_pad + latent_dim]
    return output, z, z_mean, z_stddev


# ----------------------------------------------------------------------------
# Pure-JAX f32 reference (for a loose correctness check of the bf16 kernel)
# ----------------------------------------------------------------------------
def vae_reference(params, x_nchw, eps):
    B = x_nchw.shape[0]
    x = x_nchw.reshape(B, -1).astype(jnp.float32)
    h = jnp.maximum(x @ params["enc_w"] + params["enc_b"], 0.0)
    mu = h @ params["mu_w"] + params["mu_b"]
    sigma = jnp.exp(h @ params["ls_w"] + params["ls_b"])
    z = mu + eps * sigma
    out = jax.nn.sigmoid(z @ params["dec_w"] + params["dec_b"])
    return out.reshape(x_nchw.shape), z, mu, sigma


if __name__ == "__main__":
    # small shapes consistent with the module
    B, C, H, W = 2, 4, 16, 16
    input_dim = C * H * W            # 1024
    encoder_out_dim = 128
    latent_dim = 32

    root = jax.random.PRNGKey(0)
    k_params, k_x, k_eps = jax.random.split(root, 3)

    params = init_vae_params(k_params, input_dim, encoder_out_dim, latent_dim)
    x = jax.random.normal(k_x, (B, C, H, W), jnp.float32)
    eps = jax.random.normal(k_eps, (B, latent_dim), jnp.float32)

    # static tiling / padding choices
    d_pad = _round_up(input_dim, 128)
    latent_pad = _round_up(max(latent_dim, 128), 128)
    tm = min(128, _round_up(B, 8))

    packed = pack_vae_params(params, d_pad=d_pad, latent_pad=latent_pad)

    fwd = jax.jit(functools.partial(
        vae_forward, input_dim=input_dim, latent_dim=latent_dim,
        d_pad=d_pad, latent_pad=latent_pad, tm=tm))

    output, z, z_mean, z_stddev = fwd(packed, x, eps)
    jax.block_until_ready(output)

    # shape / sanity checks
    assert output.shape == (B, C, H, W)
    assert z.shape == (B, latent_dim)
    assert z_mean.shape == (B, latent_dim)
    assert z_stddev.shape == (B, latent_dim)
    assert bool(jnp.all(jnp.isfinite(output)))

    # loose numerical check against f32 reference (bf16 matmul inputs)
    ro, rz, rmu, rsig = vae_reference(params, x, eps)
    assert bool(jnp.allclose(output, ro, atol=5e-2, rtol=5e-2))
    assert bool(jnp.allclose(z, rz, atol=5e-2, rtol=5e-2))
    assert bool(jnp.allclose(z_mean, rmu, atol=5e-2, rtol=5e-2))
    assert bool(jnp.allclose(z_stddev, rsig, atol=5e-2, rtol=5e-2))

    print("KERNEL_OK")
</pallas_src>

<mosaic_0001>
module attributes {stable_mosaic.version = 11 : i64} {
  func.func @_vae_fused_kernel(%arg0: i32, %arg1: memref<8x1024xbf16, #tpu.memory_space<vmem>>, %arg2: memref<1024x128xbf16, #tpu.memory_space<vmem>>, %arg3: memref<1x128xf32, #tpu.memory_space<vmem>>, %arg4: memref<128x256xbf16, #tpu.memory_space<vmem>>, %arg5: memref<1x256xf32, #tpu.memory_space<vmem>>, %arg6: memref<128x1024xbf16, #tpu.memory_space<vmem>>, %arg7: memref<1x1024xf32, #tpu.memory_space<vmem>>, %arg8: memref<8x128xf32, #tpu.memory_space<vmem>>, %arg9: memref<8x1024xf32, #tpu.memory_space<vmem>>, %arg10: memref<8x384xf32, #tpu.memory_space<vmem>>) attributes {dimension_semantics = [#tpu.dimension_semantics<parallel>], iteration_bounds = array<i64: 1>, scalar_prefetch = 0 : i64, scratch_operands = 0 : i64, tpu.core_type = #tpu.core_type<tc>, window_params = [{transform_indices = @transform_0, window_bounds = array<i64: 8, 1024>}, {pipeline_mode = #tpu.pipeline_mode<synchronous>, transform_indices = @transform_1, window_bounds = array<i64: 1024, 128>}, {pipeline_mode = #tpu.pipeline_mode<synchronous>, transform_indices = @transform_2, window_bounds = array<i64: 1, 128>}, {pipeline_mode = #tpu.pipeline_mode<synchronous>, transform_indices = @transform_3, window_bounds = array<i64: 128, 256>}, {pipeline_mode = #tpu.pipeline_mode<synchronous>, transform_indices = @transform_4, window_bounds = array<i64: 1, 256>}, {pipeline_mode = #tpu.pipeline_mode<synchronous>, transform_indices = @transform_5, window_bounds = array<i64: 128, 1024>}, {pipeline_mode = #tpu.pipeline_mode<synchronous>, transform_indices = @transform_6, window_bounds = array<i64: 1, 1024>}, {transform_indices = @transform_7, window_bounds = array<i64: 8, 128>}, {transform_indices = @transform_8, window_bounds = array<i64: 8, 1024>}, {transform_indices = @transform_9, window_bounds = array<i64: 8, 384>}]} {
    %c0 = arith.constant 0 : index
    %c0_0 = arith.constant 0 : index
    %0 = vector.load %arg1[%c0, %c0_0] : memref<8x1024xbf16, #tpu.memory_space<vmem>>, vector<8x1024xbf16>
    %c0_1 = arith.constant 0 : index
    %c0_2 = arith.constant 0 : index
    %1 = vector.load %arg2[%c0_1, %c0_2] : memref<1024x128xbf16, #tpu.memory_space<vmem>>, vector<1024x128xbf16>
    %cst = arith.constant dense<0.000000e+00> : vector<8x128xf32>
    %2 = tpu.matmul %0, %1, %cst {dimension_numbers = #tpu.dot_dimension_numbers<[1], [0], [0], [1], [0, 0, 1, 1], [], []>} : vector<8x1024xbf16>, vector<1024x128xbf16>, vector<8x128xf32> -> vector<8x128xf32>
    %c0_3 = arith.constant 0 : index
    %c0_4 = arith.constant 0 : index
    %3 = vector.load %arg3[%c0_3, %c0_4] : memref<1x128xf32, #tpu.memory_space<vmem>>, vector<1x128xf32>
    %4 = vector.broadcast %3 : vector<1x128xf32> to vector<8x128xf32>
    %5 = arith.addf %2, %4 : vector<8x128xf32>
    %cst_5 = arith.constant 0.000000e+00 : f32
    %6 = vector.broadcast %cst_5 : f32 to vector<8x128xf32>
    %7 = arith.maximumf %5, %6 : vector<8x128xf32>
    %8 = arith.truncf %7 : vector<8x128xf32> to vector<8x128xbf16>
    %c0_6 = arith.constant 0 : index
    %c0_7 = arith.constant 0 : index
    %9 = vector.load %arg4[%c0_6, %c0_7] : memref<128x256xbf16, #tpu.memory_space<vmem>>, vector<128x256xbf16>
    %cst_8 = arith.constant dense<0.000000e+00> : vector<8x256xf32>
    %10 = tpu.matmul %8, %9, %cst_8 {dimension_numbers = #tpu.dot_dimension_numbers<[1], [0], [0], [1], [0, 0, 1, 1], [], []>} : vector<8x128xbf16>, vector<128x256xbf16>, vector<8x256xf32> -> vector<8x256xf32>
    %c0_9 = arith.constant 0 : index
    %c0_10 = arith.constant 0 : index
    %11 = vector.load %arg5[%c0_9, %c0_10] : memref<1x256xf32, #tpu.memory_space<vmem>>, vector<1x256xf32>
    %12 = vector.broadcast %11 : vector<1x256xf32> to vector<8x256xf32>
    %13 = arith.addf %10, %12 : vector<8x256xf32>
    %14 = vector.extract_strided_slice %13 {offsets = [0, 0], sizes = [8, 128], strides = [1, 1]} : vector<8x256xf32> to vector<8x128xf32>
    %15 = vector.extract_strided_slice %13 {offsets = [0, 128], sizes = [8, 128], strides = [1, 1]} : vector<8x256xf32> to vector<8x128xf32>
    %16 = math.exp %15 : vector<8x128xf32>
    %c0_11 = arith.constant 0 : index
    %c0_12 = arith.constant 0 : index
    %17 = vector.load %arg8[%c0_11, %c0_12] : memref<8x128xf32, #tpu.memory_space<vmem>>, vector<8x128xf32>
    %18 = arith.mulf %17, %16 : vector<8x128xf32>
    %19 = arith.addf %14, %18 : vector<8x128xf32>
    %20 = arith.truncf %19 : vector<8x128xf32> to vector<8x128xbf16>
    %c0_13 = arith.constant 0 : index
    %c0_14 = arith.constant 0 : index
    %21 = vector.load %arg6[%c0_13, %c0_14] : memref<128x1024xbf16, #tpu.memory_space<vmem>>, vector<128x1024xbf16>
    %cst_15 = arith.constant dense<0.000000e+00> : vector<8x1024xf32>
    %22 = tpu.matmul %20, %21, %cst_15 {dimension_numbers = #tpu.dot_dimension_numbers<[1], [0], [0], [1], [0, 0, 1, 1], [], []>} : vector<8x128xbf16>, vector<128x1024xbf16>, vector<8x1024xf32> -> vector<8x1024xf32>
    %c0_16 = arith.constant 0 : index
    %c0_17 = arith.constant 0 : index
    %23 = vector.load %arg7[%c0_16, %c0_17] : memref<1x1024xf32, #tpu.memory_space<vmem>>, vector<1x1024xf32>
    %24 = vector.broadcast %23 : vector<1x1024xf32> to vector<8x1024xf32>
    %25 = arith.addf %22, %24 : vector<8x1024xf32>
    %26 = arith.negf %25 : vector<8x1024xf32>
    %27 = math.exp %26 : vector<8x1024xf32>
    %cst_18 = arith.constant 1.000000e+00 : f32
    %28 = vector.broadcast %cst_18 : f32 to vector<8x1024xf32>
    %29 = arith.addf %28, %27 : vector<8x1024xf32>
    %30 = arith.divf %28, %29 : vector<8x1024xf32>
    %c0_19 = arith.constant 0 : index
    %c0_20 = arith.constant 0 : index
    %31 = vector.load %arg9[%c0_19, %c0_20] : memref<8x1024xf32, #tpu.memory_space<vmem>>, vector<8x1024xf32>
    tpu.vector_store %arg9[%c0_19, %c0_20], %30 {strides = array<i32>} : memref<8x1024xf32, #tpu.memory_space<vmem>>, vector<8x1024xf32>,
    %32 = tpu.concatenate %19, %14, %16 in 1 : vector<8x128xf32>, vector<8x128xf32>, vector<8x128xf32> -> vector<8x384xf32>
    %c0_21 = arith.constant 0 : index
    %c0_22 = arith.constant 0 : index
    %33 = vector.load %arg10[%c0_21, %c0_22] : memref<8x384xf32, #tpu.memory_space<vmem>>, vector<8x384xf32>
    tpu.vector_store %arg10[%c0_21, %c0_22], %32 {strides = array<i32>} : memref<8x384xf32, #tpu.memory_space<vmem>>, vector<8x384xf32>,
    return
  }
  func.func @transform_0(%arg0: i32) -> (i32, i32) {
    %c0_i32 = arith.constant 0 : i32
    %c0_i32_0 = arith.constant 0 : i32
    return %arg0, %c0_i32 : i32, i32
  }
  func.func @transform_1(%arg0: i32) -> (i32, i32) {
    %c0_i32 = arith.constant 0 : i32
    %c0_i32_0 = arith.constant 0 : i32
    %c0_i32_1 = arith.constant 0 : i32
    return %c0_i32, %c0_i32_0 : i32, i32
  }
  func.func @transform_2(%arg0: i32) -> (i32, i32) {
    %c0_i32 = arith.constant 0 : i32
    %c0_i32_0 = arith.constant 0 : i32
    %c0_i32_1 = arith.constant 0 : i32
    return %c0_i32, %c0_i32_0 : i32, i32
  }
  func.func @transform_3(%arg0: i32) -> (i32, i32) {
    %c0_i32 = arith.constant 0 : i32
    %c0_i32_0 = arith.constant 0 : i32
    %c0_i32_1 = arith.constant 0 : i32
    return %c0_i32, %c0_i32_0 : i32, i32
  }
  func.func @transform_4(%arg0: i32) -> (i32, i32) {
    %c0_i32 = arith.constant 0 : i32
    %c0_i32_0 = arith.constant 0 : i32
    %c0_i32_1 = arith.constant 0 : i32
    return %c0_i32, %c0_i32_0 : i32, i32
  }
  func.func @transform_5(%arg0: i32) -> (i32, i32) {
    %c0_i32 = arith.constant 0 : i32
    %c0_i32_0 = arith.constant 0 : i32
    %c0_i32_1 = arith.constant 0 : i32
    return %c0_i32, %c0_i32_0 : i32, i32
  }
  func.func @transform_6(%arg0: i32) -> (i32, i32) {
    %c0_i32 = arith.constant 0 : i32
    %c0_i32_0 = arith.constant 0 : i32
    %c0_i32_1 = arith.constant 0 : i32
    return %c0_i32, %c0_i32_0 : i32, i32
  }
  func.func @transform_7(%arg0: i32) -> (i32, i32) {
    %c0_i32 = arith.constant 0 : i32
    %c0_i32_0 = arith.constant 0 : i32
    return %arg0, %c0_i32 : i32, i32
  }
  func.func @transform_8(%arg0: i32) -> (i32, i32) {
    %c0_i32 = arith.constant 0 : i32
    %c0_i32_0 = arith.constant 0 : i32
    return %arg0, %c0_i32 : i32, i32
  }
  func.func @transform_9(%arg0: i32) -> (i32, i32) {
    %c0_i32 = arith.constant 0 : i32
    %c0_i32_0 = arith.constant 0 : i32
    return %arg0, %c0_i32 : i32, i32
  }
}

</mosaic_0001>

<bundles_post_ra>
// kernel: vae_forward.1
= control target key start
LH: loop header
LB: loop body
LE: loop exit
PB: predicated region body
PF: predicated region fallthrough
CT: control target
= control target key end

     0   :  { %15 = vsyncpa [#allocation3], 0  ;;  %s2635_s0 = inlined_call_operand.vmem [shape: bf16[8,1024], index: 0, kind: input, shape index: {}]   ;;  %s2636_s1 = inlined_call_operand.hbm [shape: bf16[1024,128], index: 1, kind: input, shape index: {}]   ;;  %s2637_s2 = inlined_call_operand.vmem [shape: f32[1,128], index: 2, kind: input, shape index: {}]   ;;  %s2638_s3 = inlined_call_operand.vmem [shape: bf16[128,256], index: 3, kind: input, shape index: {}]   ;;  %s2639_s4 = inlined_call_operand.vmem [shape: f32[1,256], index: 4, kind: input, shape index: {}]   ;;  %s2640_s5 = inlined_call_operand.hbm [shape: bf16[128,1024], index: 5, kind: input, shape index: {}]   ;;  %s2641_s6 = inlined_call_operand.vmem [shape: f32[1,1024], index: 6, kind: input, shape index: {}]   ;;  %s2642_s7 = inlined_call_operand.vmem [shape: f32[8,128], index: 7, kind: input, shape index: {}]   ;;  %s2643_s8 = inlined_call_operand.vmem [shape: f32[8,1024], index: 8, kind: output, shape index: {0}]   ;;  %s2644_s9 = inlined_call_operand.vmem [shape: f32[8,384], index: 9, kind: output, shape index: {1}]  }
   0x1   :  { %s23_s11 = sshll.u32 %s2636_s1, 4  ;;  %s24_s11 = int_to_ptr.hbm [resolvable:$true] %s23_s11 }
   0x2   :  { %16 = vsyncpa [#allocation5], 0  ;;  %s2351_s12 = smov [#allocation2]   ;;  %s42_s16 = sshll.u32 %s2640_s5, 4  ;;  %s43_s16 = int_to_ptr.hbm [resolvable:$true] %s42_s16 }
   0x3   :  { %s25_s13 = sshll.u32 %s2351_s12, 4  ;;  %s2352_s17 = smov 64   ;;  %s26_s13 = int_to_ptr.vmem [resolvable:$true] %s25_s13 }
   0x4   :  { %s2353_s18 = smov 4   ;;  %s2354_s19 = smov [#allocation4]  }
   0x5   :  { %31 = dma.hbm_to_vmem [thread:$0]  %s24_s11, 8192, %s26_s13, [#allocation3], %s2352_s17, %s2352_s17, %s2353_s18  }
   0x6   :  { %s44_s20 = sshll.u32 %s2354_s19, 4  ;;  %s2355_s21 = smov 512   ;;  %s45_s20 = int_to_ptr.vmem [resolvable:$true] %s44_s20 }
   0x7   :  { %s2356_s22 = smov 32  }
   0x8   :  { %50 = dma.hbm_to_vmem [thread:$0]  %s43_s16, 8192, %s45_s20, [#allocation5], %s2355_s21, %s2355_s21, %s2356_s22  }
   0x9   :  { %2347 = dma.done.wait [#allocation3], 8192  }
   0xa   :  { %2348 = vsyncadd [#allocation3], 4294959104 }
   0xb   :  { %2349 = dma.done.wait [#allocation5], 8192  }
   0xc   :  { %2350 = vsyncadd [#allocation5], 4294959104  ;;  %v2121_v0 = vld [vmem:[#allocation2 + $0x38] sm:$0xff]  ;;  %v2120_v4 = vld [vmem:[#allocation2 + $0x30] sm:$0xff] }
   0xd   :  { %v2129_v1 = vld [vmem:[#allocation2 + $0x78] sm:$0xff]  ;;  %611 = vmatpush.bf16.msra.mxu0 %v2121_v0  ;;  %v2128_v5 = vld [vmem:[#allocation2 + $0x70] sm:$0xff]  ;;  %v2119_v8 = vld [vmem:[#allocation2 + $0x28] sm:$0xff] }
   0xe   :  { %v2137_v2 = vld [vmem:[#allocation2 + $0xb8] sm:$0xff]  ;;  %624 = vmatpush.bf16.msra.mxu1 %v2129_v1  ;;  %v2136_v6 = vld [vmem:[#allocation2 + $0xb0] sm:$0xff]  ;;  %v2127_v9 = vld [vmem:[#allocation2 + $0x68] sm:$0xff] }
   0xf   :  { %v2145_v3 = vld [vmem:[#allocation2 + $0xf8] sm:$0xff]  ;;  %637 = vmatpush.bf16.msra.mxu2 %v2137_v2  ;;  %v2144_v7 = vld [vmem:[#allocation2 + $0xf0] sm:$0xff]  ;;  %v2135_v10 = vld [vmem:[#allocation2 + $0xa8] sm:$0xff] }
  0x10   :  { %650 = vmatpush.bf16.msra.mxu3 %v2145_v3  ;;  %v2143_v11 = vld [vmem:[#allocation2 + $0xe8] sm:$0xff]  ;;  %v2118_v12 = vld [vmem:[#allocation2 + $0x20] sm:$0xff]  ;;  %v2117_v16 = vld [vmem:[#allocation2 + $0x18] sm:$0xff] }
  0x11   :  { %612 = vmatpush.bf16.msra.mxu0 %v2120_v4  ;;  %v2126_v13 = vld [vmem:[#allocation2 + $0x60] sm:$0xff]  ;;  %v2125_v17 = vld [vmem:[#allocation2 + $0x58] sm:$0xff]  ;;  %v2116_v20 = vld [vmem:[#allocation2 + $0x10] sm:$0xff] }
  0x12   :  { %625 = vmatpush.bf16.msra.mxu1 %v2128_v5  ;;  %v2134_v14 = vld [vmem:[#allocation2 + $0xa0] sm:$0xff]  ;;  %v2133_v18 = vld [vmem:[#allocation2 + $0x98] sm:$0xff]  ;;  %v2124_v21 = vld [vmem:[#allocation2 + $0x50] sm:$0xff] }
  0x13   :  { %638 = vmatpush.bf16.msra.mxu2 %v2136_v6  ;;  %v2142_v15 = vld [vmem:[#allocation2 + $0xe0] sm:$0xff]  ;;  %v2141_v19 = vld [vmem:[#allocation2 + $0xd8] sm:$0xff]  ;;  %v2132_v22 = vld [vmem:[#allocation2 + $0x90] sm:$0xff] }
  0x14   :  { %651 = vmatpush.bf16.msra.mxu3 %v2144_v7  ;;  %v2140_v23 = vld [vmem:[#allocation2 + $0xd0] sm:$0xff]  ;;  %v2115_v24 = vld [vmem:[#allocation2 + $0x8] sm:$0xff]  ;;  %v63_v29 = vld [vmem:[%s2635_s0] sm:$0xff] }
  0x15   :  { %613 = vmatpush.bf16.msra.mxu0 %v2119_v8  ;;  %v2123_v25 = vld [vmem:[#allocation2 + $0x48] sm:$0xff]  ;;  %v2114_v30 = vld [vmem:[#allocation2] sm:$0xff]  ;;  %v203_v33 = vunpack.c.l.b16 %v63_v29  ;;  %v204_v37 = vunpack.c.h.b16 %v63_v29  ;;  %v2153_v38 = vld [vmem:[#allocation2 + $0x138] sm:$0xff] }
  0x16   :  { %626 = vmatpush.bf16.msra.mxu1 %v2127_v9  ;;  %v2131_v26 = vld [vmem:[#allocation2 + $0x88] sm:$0xff]  ;;  %v2122_v31 = vld [vmem:[#allocation2 + $0x40] sm:$0xff]  ;;  %v2161_v39 = vld [vmem:[#allocation2 + $0x178] sm:$0xff] }
  0x17   :  { %639 = vmatpush.bf16.msra.mxu2 %v2135_v10  ;;  %v2139_v27 = vld [vmem:[#allocation2 + $0xc8] sm:$0xff]  ;;  %v2130_v34 = vld [vmem:[#allocation2 + $0x80] sm:$0xff]  ;;  %v2169_v40 = vld [vmem:[#allocation2 + $0x1b8] sm:$0xff]  ;;  %v211_v43 = vpack.c.b16 %v203_v33, %v203_v33  ;;  %v212_v45 = vpack.c.b16 %v204_v37, %v204_v37 }
  0x18   :  { %652 = vmatpush.bf16.msra.mxu3 %v2143_v11  ;;  %v64_v28 = vld [vmem:[%s2635_s0 + $0x8] sm:$0xff]  ;;  %v2138_v35 = vld [vmem:[#allocation2 + $0xc0] sm:$0xff]  ;;  %v2177_v41 = vld [vmem:[#allocation2 + $0x1f8] sm:$0xff] }
  0x19   :  { %614 = vmatpush.bf16.msra.mxu0 %v2118_v12  ;;  %v205_v32 = vunpack.c.l.b16 %v64_v28  ;;  %v206_v36 = vunpack.c.h.b16 %v64_v28  ;;  %v2152_v46 = vld [vmem:[#allocation2 + $0x130] sm:$0xff]  ;;  %v2151_v50 = vld [vmem:[#allocation2 + $0x128] sm:$0xff]  ;;  %v2150_v54 = vld [vmem:[#allocation2 + $0x120] sm:$0xff] }
  0x1a   :  { %627 = vmatpush.bf16.msra.mxu1 %v2126_v13  ;;  %v2160_v47 = vld [vmem:[#allocation2 + $0x170] sm:$0xff]  ;;  %v2159_v51 = vld [vmem:[#allocation2 + $0x168] sm:$0xff]  ;;  %v2158_v55 = vld [vmem:[#allocation2 + $0x160] sm:$0xff] }
  0x1b   :  { %640 = vmatpush.bf16.msra.mxu2 %v2134_v14  ;;  %v213_v42 = vpack.c.b16 %v205_v32, %v205_v32  ;;  %v214_v44 = vpack.c.b16 %v206_v36, %v206_v36  ;;  %v2168_v48 = vld [vmem:[#allocation2 + $0x1b0] sm:$0xff]  ;;  %v2167_v52 = vld [vmem:[#allocation2 + $0x1a8] sm:$0xff]  ;;  %v2166_v56 = vld [vmem:[#allocation2 + $0x1a0] sm:$0xff] }
  0x1c   :  { %653 = vmatpush.bf16.msra.mxu3 %v2142_v15  ;;  %v2176_v49 = vld [vmem:[#allocation2 + $0x1f0] sm:$0xff]  ;;  %v2175_v53 = vld [vmem:[#allocation2 + $0x1e8] sm:$0xff]  ;;  %v2174_v57 = vld [vmem:[#allocation2 + $0x1e0] sm:$0xff] }
  0x1d   :  { %615 = vmatpush.bf16.msra.mxu0 %v2117_v16  ;;  %v2149_v58 = vld [vmem:[#allocation2 + $0x118] sm:$0xff]  ;;  %v2148_v62 = vld [vmem:[#allocation2 + $0x110] sm:$0xff]  ;;  %v2147_v2 = vld [vmem:[#allocation2 + $0x108] sm:$0xff] }
  0x1e   :  { %628 = vmatpush.bf16.msra.mxu1 %v2125_v17  ;;  %v2157_v59 = vld [vmem:[#allocation2 + $0x158] sm:$0xff]  ;;  %v2156_v63 = vld [vmem:[#allocation2 + $0x150] sm:$0xff]  ;;  %v2155_v3 = vld [vmem:[#allocation2 + $0x148] sm:$0xff] }
  0x1f   :  { %641 = vmatpush.bf16.msra.mxu2 %v2133_v18  ;;  %v2165_v60 = vld [vmem:[#allocation2 + $0x198] sm:$0xff]  ;;  %v2164_v0 = vld [vmem:[#allocation2 + $0x190] sm:$0xff]  ;;  %v2163_v5 = vld [vmem:[#allocation2 + $0x188] sm:$0xff] }
  0x20   :  { %654 = vmatpush.bf16.msra.mxu3 %v2141_v19  ;;  %v2173_v61 = vld [vmem:[#allocation2 + $0x1d8] sm:$0xff]  ;;  %v2172_v1 = vld [vmem:[#allocation2 + $0x1d0] sm:$0xff]  ;;  %v2171_v6 = vld [vmem:[#allocation2 + $0x1c8] sm:$0xff] }
  0x21   :  { %616 = vmatpush.bf16.msra.mxu0 %v2116_v20  ;;  %v65_v4 = vld [vmem:[%s2635_s0 + $0x10] sm:$0xff]  ;;  %v66_v7 = vld [vmem:[%s2635_s0 + $0x18] sm:$0xff]  ;;  %v2146_v10 = vld [vmem:[#allocation2 + $0x100] sm:$0xff] }
  0x22   :  { %629 = vmatpush.bf16.msra.mxu1 %v2124_v21  ;;  %v207_v8 = vunpack.c.l.b16 %v65_v4  ;;  %v208_v9 = vunpack.c.h.b16 %v65_v4  ;;  %v2154_v11 = vld [vmem:[#allocation2 + $0x140] sm:$0xff]  ;;  %v209_v12 = vunpack.c.l.b16 %v66_v7  ;;  %v210_v13 = vunpack.c.h.b16 %v66_v7  ;;  %v1844_v20 = vld [vmem:[%s2638_s3 + $0x70] sm:$0xf]  ;;  %v2193_v21 = vld [vmem:[%s2638_s3 + $0x74] sm:$0xf0] }
  0x23   :  { %642 = vmatpush.bf16.msra.mxu2 %v2132_v22  ;;  %v2162_v14 = vld [vmem:[#allocation2 + $0x180] sm:$0xff]  ;;  %v2192_v22 = vld [vmem:[%s2638_s3 + $0x74] sm:$0xf]  ;;  %v1838_v29 = vld [vmem:[%s2638_s3 + $0x68] sm:$0xf0] }
  0x24   :  { %655 = vmatpush.bf16.msra.mxu3 %v2140_v23  ;;  %v2170_v15 = vld [vmem:[#allocation2 + $0x1c0] sm:$0xff]  ;;  %v215_v16 = vpack.c.b16 %v207_v8, %v207_v8  ;;  %v216_v17 = vpack.c.b16 %v208_v9, %v208_v9  ;;  %v217_v18 = vpack.c.b16 %v209_v12, %v209_v12  ;;  %v218_v19 = vpack.c.b16 %v210_v13, %v210_v13  ;;  %v1828_v32 = vld [vmem:[%s2638_s3 + $0x50] sm:$0xf]  ;;  %v2189_v33 = vld [vmem:[%s2638_s3 + $0x54] sm:$0xf0] }
  0x25   :  { %617 = vmatpush.bf16.msra.mxu0 %v2115_v24  ;;  %v1845_v23 = vor.u32 %v2193_v21, %v1844_v20  ;;  %v1846_v24 = vld [vmem:[%s2638_s3 + $0x78] sm:$0xf0]  ;;  %v2190_v28 = vld [vmem:[%s2638_s3 + $0x64] sm:$0xf]  ;;  %v1790_v7 = vld [vmem:[%s2638_s3 + $0x8] sm:$0xf0] }
  0x26   :  { %630 = vmatpush.bf16.msra.mxu1 %v2123_v25  ;;  %v1836_v25 = vld [vmem:[%s2638_s3 + $0x60] sm:$0xf]  ;;  %v1830_v36 = vld [vmem:[%s2638_s3 + $0x58] sm:$0xf0]  ;;  %v2178_v4 = vld [vmem:[%s2638_s3 + $0x4] sm:$0xf] }
  0x27   :  { %643 = vmatpush.bf16.msra.mxu2 %v2131_v26  ;;  %v2191_v26 = vld [vmem:[%s2638_s3 + $0x64] sm:$0xf0]  ;;  %v1793_v9 = vor.u32 %v2178_v4, %v1790_v7  ;;  %v2254_v12 = vld [vmem:[#allocation4 + $0x1dc] sm:$0xf0]  ;;  %v2250_v13 = vld [vmem:[#allocation4 + $0x1c4] sm:$0xf] }
  0x28   :  { %656 = vmatpush.bf16.msra.mxu3 %v2139_v27  ;;  %v1849_v27 = vor.u32 %v2192_v22, %v1846_v24  ;;  %v2251_v22 = vld [vmem:[#allocation4 + $0x1cc] sm:$0xf]  ;;  %v2044_v24 = vld [vmem:[#allocation4 + $0x180] sm:$0xf]  ;;  %v2223_v7 = vld [vmem:[#allocation4 + $0xe4] sm:$0xf0] }
  0x29   :  { %618 = vmatpush.bf16.msra.mxu0 %v2114_v30  ;;  %v1837_v30 = vor.u32 %v2191_v26, %v1836_v25  ;;  %v2246_v26 = vld [vmem:[#allocation4 + $0x19c] sm:$0xf0] }
  0x2a   :  { %631 = vmatpush.bf16.msra.mxu1 %v2122_v31  ;;  %v1841_v31 = vor.u32 %v2190_v28, %v1838_v29  ;;  %v2046_v28 = vld [vmem:[#allocation4 + $0x1a0] sm:$0xf0] }
  0x2b   :  { %644 = vmatpush.bf16.msra.mxu2 %v2130_v34  ;;  %v2188_v34 = vld [vmem:[%s2638_s3 + $0x54] sm:$0xf] }
  0x2c   :  { %657 = vmatpush.bf16.msra.mxu3 %v2138_v35  ;;  %619 = vmatmul.bf16.vlgmr.msra.gmra.mxu0 %v211_v43  ;;  %v1829_v35 = vor.u32 %v2189_v33, %v1828_v32  ;;  %v1833_v37 = vor.u32 %v2188_v34, %v1830_v36  ;;  %v2052_v32 = vld [vmem:[#allocation4 + $0x188] sm:$0xf]  ;;  %v2243_v34 = vld [vmem:[#allocation4 + $0x18c] sm:$0xf] }
  0x2d   :  { %663 = vmatpush.bf16.msrb.mxu0 %v2153_v38  ;;  %632 = vmatmul.bf16.vlgmr.msra.gmra.mxu1 %v212_v45  ;;  %v1820_v38 = vld [vmem:[%s2638_s3 + $0x40] sm:$0xf]  ;;  %v2185_v45 = vld [vmem:[%s2638_s3 + $0x34] sm:$0xf0]  ;;  %v2247_v33 = vld [vmem:[#allocation4 + $0x1a4] sm:$0xf0] }
  0x2e   :  { %676 = vmatpush.bf16.msrb.mxu1 %v2161_v39  ;;  %645 = vmatmul.bf16.vlgmr.msra.gmra.mxu2 %v213_v42  ;;  %v2187_v39 = vld [vmem:[%s2638_s3 + $0x44] sm:$0xf0]  ;;  %v2054_v36 = vld [vmem:[#allocation4 + $0x1a8] sm:$0xf0] }
  0x2f   :  { %689 = vmatpush.bf16.msrb.mxu2 %v2169_v40  ;;  %658 = vmatmul.bf16.vlgmr.msra.gmra.mxu3 %v214_v44  ;;  %v2186_v40 = vld [vmem:[%s2638_s3 + $0x44] sm:$0xf]  ;;  %v1821_v42 = vor.u32 %v2187_v39, %v1820_v38  ;;  %v1812_v44 = vld [vmem:[%s2638_s3 + $0x30] sm:$0xf]  ;;  %v2238_v38 = vld [vmem:[#allocation4 + $0x15c] sm:$0xf0]  ;;  %v2057_v39 = vor.u32 %v2243_v34, %v2054_v36 }
  0x30   :  { %702 = vmatpush.bf16.msrb.mxu3 %v2177_v41  ;;  %v1822_v41 = vld [vmem:[%s2638_s3 + $0x48] sm:$0xf0] }
  0x31   :  { %664 = vmatpush.bf16.msrb.mxu0 %v2152_v46  ;;  %v1825_v43 = vor.u32 %v2186_v40, %v1822_v41  ;;  %v2184_v46 = vld [vmem:[%s2638_s3 + $0x34] sm:$0xf]  ;;  %v2234_v40 = vld [vmem:[#allocation4 + $0x144] sm:$0xf]  ;;  %v1894_v36 = vld [vmem:[#allocation4 + $0x68] sm:$0xf0] }
  0x32   :  { %677 = vmatpush.bf16.msrb.mxu1 %v2160_v47  ;;  %v1813_v47 = vor.u32 %v2185_v45, %v1812_v44  ;;  %v2014_v41 = vld [vmem:[#allocation4 + $0x160] sm:$0xf0]  ;;  %v2239_v44 = vld [vmem:[#allocation4 + $0x164] sm:$0xf0]  ;;  %v2235_v45 = vld [vmem:[#allocation4 + $0x14c] sm:$0xf] }
  0x33   :  { %690 = vmatpush.bf16.msrb.mxu2 %v2168_v48  ;;  %v1814_v48 = vld [vmem:[%s2638_s3 + $0x38] sm:$0xf0] }
  0x34   :  { %703 = vmatpush.bf16.msrb.mxu3 %v2176_v49  ;;  %v1817_v49 = vor.u32 %v2184_v46, %v1814_v48  ;;  %v2022_v46 = vld [vmem:[#allocation4 + $0x168] sm:$0xf0]  ;;  %v2017_v48 = vor.u32 %v2234_v40, %v2014_v41 }
  0x35   :  { %665 = vmatpush.bf16.msrb.mxu0 %v2151_v50  ;;  %v1804_v50 = vld [vmem:[%s2638_s3 + $0x20] sm:$0xf] }
  0x36   :  { %678 = vmatpush.bf16.msrb.mxu1 %v2159_v51  ;;  %v2183_v51 = vld [vmem:[%s2638_s3 + $0x24] sm:$0xf0] }
  0x37   :  { %691 = vmatpush.bf16.msrb.mxu2 %v2167_v52  ;;  %v2182_v52 = vld [vmem:[%s2638_s3 + $0x24] sm:$0xf] }
  0x38   :  { %704 = vmatpush.bf16.msrb.mxu3 %v2175_v53 }
  0x39   :  { %666 = vmatpush.bf16.msrb.mxu0 %v2150_v54  ;;  %v1805_v54 = vor.u32 %v2183_v51, %v1804_v50  ;;  %v1980_v50 = vld [vmem:[#allocation4 + $0x100] sm:$0xf] }
  0x3a   :  { %679 = vmatpush.bf16.msrb.mxu1 %v2158_v55  ;;  %v1806_v55 = vld [vmem:[%s2638_s3 + $0x28] sm:$0xf0]  ;;  %v2230_v51 = vld [vmem:[#allocation4 + $0x11c] sm:$0xf0] }
  0x3b   :  { %692 = vmatpush.bf16.msrb.mxu2 %v2166_v56 }
  0x3c   :  { %705 = vmatpush.bf16.msrb.mxu3 %v2174_v57  ;;  %v1809_v57 = vor.u32 %v2182_v52, %v1806_v55  ;;  %v2226_v52 = vld [vmem:[#allocation4 + $0x104] sm:$0xf]  ;;  %v1988_v55 = vld [vmem:[#allocation4 + $0x108] sm:$0xf] }
  0x3d   :  { %667 = vmatpush.bf16.msrb.mxu0 %v2149_v58  ;;  %v1796_v58 = vld [vmem:[%s2638_s3 + $0x10] sm:$0xf] }
  0x3e   :  { %680 = vmatpush.bf16.msrb.mxu1 %v2157_v59  ;;  %v2181_v59 = vld [vmem:[%s2638_s3 + $0x14] sm:$0xf0] }
  0x3f   :  { %693 = vmatpush.bf16.msrb.mxu2 %v2165_v60  ;;  %v2180_v60 = vld [vmem:[%s2638_s3 + $0x14] sm:$0xf] }
  0x40   :  { %706 = vmatpush.bf16.msrb.mxu3 %v2173_v61  ;;  %v1797_v61 = vor.u32 %v2181_v59, %v1796_v58  ;;  %v2227_v58 = vld [vmem:[#allocation4 + $0x10c] sm:$0xf] }
  0x41   :  { %668 = vmatpush.bf16.msrb.mxu0 %v2148_v62  ;;  %v1798_v62 = vld [vmem:[%s2638_s3 + $0x18] sm:$0xf0]  ;;  %v1990_v59 = vld [vmem:[#allocation4 + $0x128] sm:$0xf0] }
  0x42   :  { %681 = vmatpush.bf16.msrb.mxu1 %v2156_v63  ;;  %v1801_v63 = vor.u32 %v2180_v60, %v1798_v62  ;;  %v1981_v60 = vor.u32 %v2230_v51, %v1980_v50  ;;  %v1993_v4 = vor.u32 %v2227_v58, %v1990_v59  ;;  %v1852_v51 = vld [vmem:[#allocation4] sm:$0xf]  ;;  %v2199_v59 = vld [vmem:[#allocation4 + $0x24] sm:$0xf0] }
  0x43   :  { %694 = vmatpush.bf16.msrb.mxu2 %v2164_v0 }
  0x44   :  { %707 = vmatpush.bf16.msrb.mxu3 %v2172_v1 }
  0x45   :  { %669 = vmatpush.bf16.msrb.mxu0 %v2147_v2  ;;  %v1788_v2 = vld [vmem:[%s2638_s3] sm:$0xf] }
  0x46   :  { %682 = vmatpush.bf16.msrb.mxu1 %v2155_v3  ;;  %v2179_v3 = vld [vmem:[%s2638_s3 + $0x4] sm:$0xf0] }
  0x47   :  { %695 = vmatpush.bf16.msrb.mxu2 %v2163_v5 }
  0x48   :  { %708 = vmatpush.bf16.msrb.mxu3 %v2171_v6  ;;  %v1789_v6 = vor.u32 %v2179_v3, %v1788_v2  ;;  %v2222_v2 = vld [vmem:[#allocation4 + $0xdc] sm:$0xf0]  ;;  %v2218_v3 = vld [vmem:[#allocation4 + $0xc4] sm:$0xf] }
  0x49   :  { %670 = vmatpush.bf16.msrb.mxu0 %v2146_v10  ;;  %v2264_v10 = vld [vmem:[%s2637_s2] ss:$0 sm:$0xff] }
  0x4a   :  { %683 = vmatpush.bf16.msrb.mxu1 %v2154_v11  ;;  %v2076_v11 = vld [vmem:[#allocation4 + $0x1c0] sm:$0xf] }
  0x4b   :  { %696 = vmatpush.bf16.msrb.mxu2 %v2162_v14 }
  0x4c   :  { %709 = vmatpush.bf16.msrb.mxu3 %v2170_v15  ;;  %671 = vmatmul.bf16.vlgmr.msrb.gmra.mxu0 %v215_v16  ;;  %v2077_v15 = vor.u32 %v2254_v12, %v2076_v11  ;;  %v2078_v16 = vld [vmem:[#allocation4 + $0x1e0] sm:$0xf0] }
  0x4d   :  { %684 = vmatmul.bf16.vlgmr.msrb.gmra.mxu1 %v216_v17  ;;  %819 = vmatpush.bf16.msra.mxu0 %v1845_v23  ;;  %v2084_v17 = vld [vmem:[#allocation4 + $0x1c8] sm:$0xf]  ;;  %v2081_v20 = vor.u32 %v2250_v13, %v2078_v16  ;;  %v2086_v23 = vld [vmem:[#allocation4 + $0x1e8] sm:$0xf0]  ;;  %v2214_v16 = vld [vmem:[#allocation4 + $0x9c] sm:$0xf0] }
  0x4e   :  { %697 = vmatmul.bf16.vlgmr.msrb.gmra.mxu2 %v217_v18  ;;  %832 = vmatpush.bf16.msra.mxu1 %v1849_v27  ;;  %v2255_v18 = vld [vmem:[#allocation4 + $0x1e4] sm:$0xf0]  ;;  %v2089_v25 = vor.u32 %v2251_v22, %v2086_v23  ;;  %v2242_v27 = vld [vmem:[#allocation4 + $0x184] sm:$0xf]  ;;  %v2211_v23 = vld [vmem:[#allocation4 + $0x8c] sm:$0xf] }
  0x4f   :  { %710 = vmatmul.bf16.vlgmr.msrb.gmra.mxu3 %v218_v19  ;;  %v2085_v21 = vor.u32 %v2255_v18, %v2084_v17  ;;  %1253 = vmatpush.bf16.msra.mxu2 %v2077_v15  ;;  %v1916_v15 = vld [vmem:[#allocation4 + $0x80] sm:$0xf]  ;;  %v2210_v17 = vld [vmem:[#allocation4 + $0x84] sm:$0xf] }
  0x50   :  { %1266 = vmatpush.bf16.msra.mxu3 %v2081_v20  ;;  %v1924_v20 = vld [vmem:[#allocation4 + $0x88] sm:$0xf] }
  0x51   :  { %820 = vmatpush.bf16.msra.mxu0 %v1837_v30  ;;  %v2045_v30 = vor.u32 %v2246_v26, %v2044_v24  ;;  %v1926_v24 = vld [vmem:[#allocation4 + $0xa8] sm:$0xf0] }
  0x52   :  { %833 = vmatpush.bf16.msra.mxu1 %v1841_v31  ;;  %v2049_v31 = vor.u32 %v2242_v27, %v2046_v28  ;;  %v1884_v27 = vld [vmem:[#allocation4 + $0x40] sm:$0xf] }
  0x53   :  { %1254 = vmatpush.bf16.msra.mxu2 %v2045_v30  ;;  %v2206_v28 = vld [vmem:[#allocation4 + $0x5c] sm:$0xf0]  ;;  %v1929_v30 = vor.u32 %v2211_v23, %v1926_v24  ;;  %v2028_v24 = vld [vmem:[#allocation4 + $0x150] sm:$0xf] }
  0x54   :  { %1267 = vmatpush.bf16.msra.mxu3 %v2049_v31  ;;  %v1886_v31 = vld [vmem:[#allocation4 + $0x60] sm:$0xf0] }
  0x55   :  { %821 = vmatpush.bf16.msra.mxu0 %v1829_v35  ;;  %v2053_v35 = vor.u32 %v2247_v33, %v2052_v32  ;;  %v1892_v32 = vld [vmem:[#allocation4 + $0x48] sm:$0xf] }
  0x56   :  { %834 = vmatpush.bf16.msra.mxu1 %v1833_v37  ;;  %v2012_v37 = vld [vmem:[#allocation4 + $0x140] sm:$0xf]  ;;  %v2207_v33 = vld [vmem:[#allocation4 + $0x64] sm:$0xf0] }
  0x58   :  { %1268 = vmatpush.bf16.msra.mxu3 %v2017_v48 }
  0x59   :  { %822 = vmatpush.bf16.msra.mxu0 %v1821_v42  ;;  %v2020_v42 = vld [vmem:[#allocation4 + $0x148] sm:$0xf] }
  0x5a   :  { %835 = vmatpush.bf16.msra.mxu1 %v1825_v43  ;;  %v2013_v43 = vor.u32 %v2238_v38, %v2012_v37 }
  0x5c   :  { %1255 = vmatpush.bf16.msra.mxu2 %v2013_v43 }
  0x5d   :  { %823 = vmatpush.bf16.msra.mxu0 %v1813_v47 }
  0x5e   :  { %836 = vmatpush.bf16.msra.mxu1 %v1817_v49  ;;  %v2021_v49 = vor.u32 %v2239_v44, %v2020_v42  ;;  %v1893_v44 = vor.u32 %v2207_v33, %v1892_v32  ;;  %v2237_v32 = vld [vmem:[#allocation4 + $0x15c] sm:$0xf] }
  0x5f   :  { %v2038_v33 = vld [vmem:[#allocation4 + $0x178] sm:$0xf0] }
  0x60   :  { %1256 = vmatpush.bf16.msra.mxu2 %v1981_v60  ;;  %v2195_v60 = vld [vmem:[#allocation4 + $0xc] sm:$0xf] }
  0x61   :  { %824 = vmatpush.bf16.msra.mxu0 %v1805_v54  ;;  %v1982_v54 = vld [vmem:[#allocation4 + $0x120] sm:$0xf0] }
  0x62   :  { %837 = vmatpush.bf16.msra.mxu1 %v1809_v57  ;;  %v2231_v57 = vld [vmem:[#allocation4 + $0x124] sm:$0xf0] }
  0x63   :  { %v1989_v62 = vor.u32 %v2231_v57, %v1988_v55  ;;  %v1854_v55 = vld [vmem:[#allocation4 + $0x20] sm:$0xf0]  ;;  %v1860_v57 = vld [vmem:[#allocation4 + $0x8] sm:$0xf] }
  0x65   :  { %825 = vmatpush.bf16.msra.mxu0 %v1797_v61 }
  0x66   :  { %838 = vmatpush.bf16.msra.mxu1 %v1801_v63  ;;  %v1948_v63 = vld [vmem:[#allocation4 + $0xc0] sm:$0xf] }
  0x69   :  { %826 = vmatpush.bf16.msra.mxu0 %v1789_v6  ;;  %v1956_v6 = vld [vmem:[#allocation4 + $0xc8] sm:$0xf] }
  0x6a   :  { %839 = vmatpush.bf16.msra.mxu1 %v1793_v9  ;;  %v1958_v9 = vld [vmem:[#allocation4 + $0xe8] sm:$0xf0] }
  0x6d   :  { %1279 = vmatpush.bf16.msrb.mxu0 %v2085_v21  ;;  %v2215_v21 = vld [vmem:[#allocation4 + $0xa4] sm:$0xf0] }
  0x6e   :  { %1292 = vmatpush.bf16.msrb.mxu1 %v2089_v25  ;;  %v1917_v25 = vor.u32 %v2214_v16, %v1916_v15  ;;  %v1925_v26 = vor.u32 %v2215_v21, %v1924_v20  ;;  %v2062_v16 = vld [vmem:[#allocation4 + $0x1b0] sm:$0xf0]  ;;  %v2245_v21 = vld [vmem:[#allocation4 + $0x19c] sm:$0xf] }
  0x71   :  { %1280 = vmatpush.bf16.msrb.mxu0 %v2053_v35  ;;  %v2203_v35 = vld [vmem:[#allocation4 + $0x4c] sm:$0xf] }
  0x72   :  { %1293 = vmatpush.bf16.msrb.mxu1 %v2057_v39  ;;  %v1885_v39 = vor.u32 %v2206_v28, %v1884_v27  ;;  %v2030_v27 = vld [vmem:[#allocation4 + $0x170] sm:$0xf0]  ;;  %v2036_v28 = vld [vmem:[#allocation4 + $0x158] sm:$0xf] }
  0x75   :  { %1281 = vmatpush.bf16.msrb.mxu0 %v2021_v49 }
  0x79   :  { %1282 = vmatpush.bf16.msrb.mxu0 %v1989_v62 }
  0xa9   :  { %v620_v53 = vpop.f32.mrf.mxu0 }
  0xaa   :  { %v2497_v56 = vpop.f32.mrf.mxu1  ;;  %v621_v29 = vadd.f32 %v2264_v10, %v620_v53  ;;  %v2025_v53 = vor.u32 %v2235_v45, %v2022_v46  ;;  %v1949_v10 = vor.u32 %v2222_v2, %v1948_v63  ;;  %v1897_v45 = vor.u32 %v2203_v35, %v1894_v36  ;;  %v2092_v63 = vld [vmem:[#allocation4 + $0x1d0] sm:$0xf] }
  0xab   :  { %v2256_v2 = vld [vmem:[#allocation4 + $0x1ec] sm:$0xf0] }
  0xac   :  { %v634_v47 = vadd.f32 %v2497_v56, %v621_v29  ;;  %v1985_v56 = vor.u32 %v2226_v52, %v1982_v54  ;;  %1294 = vmatpush.bf16.msrb.mxu1 %v2025_v53  ;;  %1257 = vmatpush.bf16.msra.mxu2 %v1949_v10  ;;  %v2202_v29 = vld [vmem:[#allocation4 + $0x44] sm:$0xf]  ;;  %v2198_v52 = vld [vmem:[#allocation4 + $0x1c] sm:$0xf0]  ;;  %v2253_v10 = vld [vmem:[#allocation4 + $0x1dc] sm:$0xf] }
  0xad   :  { %v1889_v43 = vor.u32 %v2202_v29, %v1886_v31  ;;  %v1853_v53 = vor.u32 %v2198_v52, %v1852_v51  ;;  %v2194_v54 = vld [vmem:[#allocation4 + $0x4] sm:$0xf]  ;;  %v2241_v29 = vld [vmem:[#allocation4 + $0x174] sm:$0xf0]  ;;  %v1996_v35 = vld [vmem:[#allocation4 + $0x110] sm:$0xf] }
  0xae   :  { %1269 = vmatpush.bf16.msra.mxu3 %v1985_v56  ;;  %v1857_v58 = vor.u32 %v2194_v54, %v1854_v55  ;;  %v1861_v56 = vor.u32 %v2199_v59, %v1860_v57  ;;  %v2037_v31 = vor.u32 %v2241_v29, %v2036_v28  ;;  %v2232_v36 = vld [vmem:[#allocation4 + $0x12c] sm:$0xf0]  ;;  %v1966_v51 = vld [vmem:[#allocation4 + $0xf0] sm:$0xf0]  ;;  %v1972_v52 = vld [vmem:[#allocation4 + $0xd8] sm:$0xf] }
  0xaf   :  { %v2221_v57 = vld [vmem:[#allocation4 + $0xdc] sm:$0xf]  ;;  %v1932_v59 = vld [vmem:[#allocation4 + $0x90] sm:$0xf] }
  0xb0   :  { %1295 = vmatpush.bf16.msrb.mxu1 %v1993_v4  ;;  %1258 = vmatpush.bf16.msra.mxu2 %v1917_v25  ;;  %v2093_v4 = vor.u32 %v2256_v2, %v2092_v63  ;;  %v2240_v25 = vld [vmem:[#allocation4 + $0x16c] sm:$0xf0]  ;;  %v1940_v2 = vld [vmem:[#allocation4 + $0x98] sm:$0xf] }
  0xb1   :  { %v2511_v0 = vpop.f32.mrf.mxu2  ;;  %v622_v5 = vpop.f32.mrf.mxu0 }
  0xb2   :  { %v2513_v1 = vpop.f32.mrf.mxu3  ;;  %v635_v8 = vpop.f32.mrf.mxu1  ;;  %v647_v61 = vadd.f32 %v2511_v0, %v634_v47  ;;  %v1950_v5 = vld [vmem:[#allocation4 + $0xe0] sm:$0xf0] }
  0xb3   :  { %v2219_v8 = vld [vmem:[#allocation4 + $0xcc] sm:$0xf]  ;;  %v1953_v13 = vor.u32 %v2218_v3, %v1950_v5  ;;  %v2252_v3 = vld [vmem:[#allocation4 + $0x1d4] sm:$0xf] }
  0xb4   :  { %v660_v11 = vadd.f32 %v2513_v1, %v647_v61  ;;  %v1961_v18 = vor.u32 %v2219_v8, %v1958_v9  ;;  %1259 = vmatpush.bf16.msra.mxu2 %v1885_v39  ;;  %v1862_v61 = vld [vmem:[#allocation4 + $0x28] sm:$0xf0]  ;;  %v2094_v5 = vld [vmem:[#allocation4 + $0x1f0] sm:$0xf0] }
  0xb5   :  { %1270 = vmatpush.bf16.msra.mxu3 %v1953_v13  ;;  %v1865_v62 = vor.u32 %v2195_v60, %v1862_v61  ;;  %v2097_v8 = vor.u32 %v2252_v3, %v2094_v5  ;;  %v2248_v13 = vld [vmem:[#allocation4 + $0x1ac] sm:$0xf0]  ;;  %v1998_v39 = vld [vmem:[#allocation4 + $0x130] sm:$0xf0]  ;;  %v2217_v3 = vld [vmem:[#allocation4 + $0xb4] sm:$0xf0] }
  0xb6   :  { %1296 = vmatpush.bf16.msrb.mxu1 %v1961_v18  ;;  %v2249_v18 = vld [vmem:[#allocation4 + $0x1b4] sm:$0xf0]  ;;  %v2216_v61 = vld [vmem:[#allocation4 + $0xac] sm:$0xf0] }
  0xb7   :  { %v1933_v63 = vor.u32 %v2216_v61, %v1932_v59 }
  0xb8   :  { %1260 = vmatpush.bf16.msra.mxu2 %v1853_v53  ;;  %v2225_v53 = vld [vmem:[#allocation4 + $0xf4] sm:$0xf0] }
  0xb9   :  { %v648_v14 = vpop.f32.mrf.mxu2  ;;  %v1973_v55 = vor.u32 %v2225_v53, %v1972_v52 }
  0xba   :  { %v661_v19 = vpop.f32.mrf.mxu3  ;;  %v1957_v14 = vor.u32 %v2223_v7, %v1956_v6  ;;  %1297 = vmatpush.bf16.msrb.mxu1 %v1929_v30  ;;  %v2100_v6 = vld [vmem:[#allocation4 + $0x1d8] sm:$0xf] }
  0xbb   :  { %v1918_v19 = vld [vmem:[#allocation4 + $0xa0] sm:$0xf0]  ;;  %v2257_v7 = vld [vmem:[#allocation4 + $0x1f4] sm:$0xf0] }
  0xbc   :  { %1283 = vmatpush.bf16.msrb.mxu0 %v1957_v14  ;;  %v1921_v1 = vor.u32 %v2210_v17, %v1918_v19  ;;  %v2101_v9 = vor.u32 %v2257_v7, %v2100_v6  ;;  %1305 = vmatpush.bf16.msrb.mxu2 %v2093_v4  ;;  %v2244_v14 = vld [vmem:[#allocation4 + $0x194] sm:$0xf]  ;;  %v2068_v17 = vld [vmem:[#allocation4 + $0x198] sm:$0xf]  ;;  %v2213_v4 = vld [vmem:[#allocation4 + $0x9c] sm:$0xf]  ;;  %v1941_v6 = vor.u32 %v2217_v3, %v1940_v2 }
  0xbd   :  { %v2065_v19 = vor.u32 %v2244_v14, %v2062_v16  ;;  %v2069_v20 = vor.u32 %v2249_v18, %v2068_v17  ;;  %v1942_v7 = vld [vmem:[#allocation4 + $0xb8] sm:$0xf0]  ;;  %v733_v16 = vld [vmem:[%s2639_s4] sm:$0x3] }
  0xbe   :  { %1271 = vmatpush.bf16.msra.mxu3 %v1921_v1  ;;  %1298 = vmatpush.bf16.msrb.mxu1 %v1897_v45  ;;  %v2236_v1 = vld [vmem:[#allocation4 + $0x154] sm:$0xf]  ;;  %v2006_v45 = vld [vmem:[#allocation4 + $0x138] sm:$0xf0]  ;;  %v735_v28 = vperm.slane %v733_v16, 0  ;;  %v736_v29 = vperm.slane %v733_v16, 1 }
  0xbf   :  { %v2033_v30 = vor.u32 %v2236_v1, %v2030_v27  ;;  %v2205_v14 = vld [vmem:[#allocation4 + $0x5c] sm:$0xf]  ;;  %v2201_v1 = vld [vmem:[#allocation4 + $0x34] sm:$0xf0] }
  0xc0   :  { %1284 = vmatpush.bf16.msrb.mxu0 %v1925_v26  ;;  %v2029_v26 = vor.u32 %v2240_v25, %v2028_v24  ;;  %v1870_v24 = vld [vmem:[#allocation4 + $0x30] sm:$0xf0]  ;;  %v1876_v25 = vld [vmem:[#allocation4 + $0x18] sm:$0xf]  ;;  %v1878_v27 = vld [vmem:[#allocation4 + $0x38] sm:$0xf0] }
  0xc2   :  { %1272 = vmatpush.bf16.msra.mxu3 %v1889_v43  ;;  %1299 = vmatpush.bf16.msrb.mxu1 %v1865_v62  ;;  %v1934_v62 = vld [vmem:[#allocation4 + $0xb0] sm:$0xf0] }
  0xc4   :  { %1285 = vmatpush.bf16.msrb.mxu0 %v1893_v44  ;;  %v2229_v44 = vld [vmem:[#allocation4 + $0x11c] sm:$0xf] }
  0xc6   :  { %1273 = vmatpush.bf16.msra.mxu3 %v1857_v58  ;;  %v1974_v58 = vld [vmem:[#allocation4 + $0xf8] sm:$0xf0] }
  0xc7   :  { %v1977_v60 = vor.u32 %v2221_v57, %v1974_v58 }
  0xc8   :  { %1286 = vmatpush.bf16.msrb.mxu0 %v1861_v56  ;;  %v2212_v56 = vld [vmem:[#allocation4 + $0x94] sm:$0xf] }
  0xc9   :  { %v672_v12 = vpop.f32.mrf.mxu0  ;;  %v1937_v5 = vor.u32 %v2212_v56, %v1934_v62 }
  0xca   :  { %v685_v0 = vpop.f32.mrf.mxu1  ;;  %v673_v22 = vadd.f32 %v672_v12, %v660_v11  ;;  %v2102_v11 = vld [vmem:[#allocation4 + $0x1f8] sm:$0xf0]  ;;  %v2060_v12 = vld [vmem:[#allocation4 + $0x190] sm:$0xf]  ;;  %1318 = vmatpush.bf16.msrb.mxu3 %v2097_v8 }
  0xcb   :  { %v2061_v15 = vor.u32 %v2248_v13, %v2060_v12  ;;  %v1900_v8 = vld [vmem:[#allocation4 + $0x50] sm:$0xf]  ;;  %v1902_v12 = vld [vmem:[#allocation4 + $0x70] sm:$0xf0]  ;;  %v2209_v13 = vld [vmem:[#allocation4 + $0x74] sm:$0xf0] }
  0xcc   :  { %v686_v34 = vadd.f32 %v685_v0, %v673_v22  ;;  %v2105_v0 = vor.u32 %v2253_v10, %v2102_v11  ;;  %v2070_v22 = vld [vmem:[#allocation4 + $0x1b8] sm:$0xf0]  ;;  %v1945_v10 = vor.u32 %v2213_v4, %v1942_v7  ;;  %v2204_v11 = vld [vmem:[#allocation4 + $0x54] sm:$0xf] }
  0xcd   :  { %v2073_v23 = vor.u32 %v2245_v21, %v2070_v22  ;;  %1306 = vmatpush.bf16.msrb.mxu2 %v2061_v15  ;;  %v1910_v15 = vld [vmem:[#allocation4 + $0x78] sm:$0xf0]  ;;  %v1905_v18 = vor.u32 %v2204_v11, %v1902_v12  ;;  %v2200_v21 = vld [vmem:[#allocation4 + $0x2c] sm:$0xf0]  ;;  %v2196_v22 = vld [vmem:[#allocation4 + $0x14] sm:$0xf] }
  0xce   :  { %1319 = vmatpush.bf16.msrb.mxu3 %v2065_v19 }
  0xd1   :  { %v698_v37 = vpop.f32.mrf.mxu2  ;;  %v674_v41 = vpop.f32.mrf.mxu0  ;;  %1307 = vmatpush.bf16.msrb.mxu2 %v2029_v26  ;;  %v2197_v26 = vld [vmem:[#allocation4 + $0x1c] sm:$0xf] }
  0xd2   :  { %v711_v38 = vpop.f32.mrf.mxu3  ;;  %v699_v40 = vadd.f32 %v698_v37, %v686_v34  ;;  %v687_v42 = vpop.f32.mrf.mxu1  ;;  %v2041_v34 = vor.u32 %v2237_v32, %v2038_v33  ;;  %v2228_v37 = vld [vmem:[#allocation4 + $0x114] sm:$0xf]  ;;  %v2233_v41 = vld [vmem:[#allocation4 + $0x134] sm:$0xf0]  ;;  %1320 = vmatpush.bf16.msrb.mxu3 %v2033_v30  ;;  %v1877_v32 = vor.u32 %v2201_v1, %v1876_v25  ;;  %v1881_v33 = vor.u32 %v2197_v26, %v1878_v27 }
  0xd3   :  { %v2001_v42 = vor.u32 %v2228_v37, %v1998_v39 }
  0xd4   :  { %v712_v46 = vadd.f32 %v711_v38, %v699_v40  ;;  %v1997_v38 = vor.u32 %v2232_v36, %v1996_v35  ;;  %v2004_v40 = vld [vmem:[#allocation4 + $0x118] sm:$0xf] }
  0xd5   :  { %v2005_v43 = vor.u32 %v2233_v41, %v2004_v40  ;;  %v847_v41 = vld [vmem:[%s2642_s7] sm:$0xff] }
  0xd6   :  { %v715_v47 = vmax.f32 %v712_v46, 0.0  ;;  %v2009_v46 = vor.u32 %v2229_v44, %v2006_v45  ;;  %1308 = vmatpush.bf16.msrb.mxu2 %v1997_v38  ;;  %1321 = vmatpush.bf16.msrb.mxu3 %v2001_v42 }
  0xd8   :  { %v716_v48 = vpack.c.bf16 %v715_v47, %v715_v47  ;;  %v1964_v47 = vld [vmem:[#allocation4 + $0xd0] sm:$0xf] }
  0xd9   :  { %v700_v49 = vpop.f32.mrf.mxu2 }
  0xda   :  { %v713_v50 = vpop.f32.mrf.mxu3  ;;  %827 = vmatmul.bf16.vlgmr.msra.gmra.mxu0 %v716_v48  ;;  %840 = vmatmul.bf16.vlgmr.msra.gmra.mxu1 %v716_v48  ;;  %v2224_v48 = vld [vmem:[#allocation4 + $0xec] sm:$0xf0]  ;;  %v2220_v49 = vld [vmem:[#allocation4 + $0xd4] sm:$0xf] }
  0xdb   :  { %1331 = vmatpush.bf16.msra.mxu0 %v2101_v9  ;;  %1344 = vmatpush.bf16.msra.mxu1 %v2105_v0  ;;  %v1965_v50 = vor.u32 %v2224_v48, %v1964_v47  ;;  %v1969_v54 = vor.u32 %v2220_v49, %v1966_v51  ;;  %v2208_v9 = vld [vmem:[#allocation4 + $0x6c] sm:$0xf0]  ;;  %v1908_v0 = vld [vmem:[#allocation4 + $0x58] sm:$0xf] }
  0xdc   :  { %v1901_v17 = vor.u32 %v2208_v9, %v1900_v8  ;;  %v1909_v19 = vor.u32 %v2209_v13, %v1908_v0 }
  0xdd   :  { %1309 = vmatpush.bf16.msrb.mxu2 %v1965_v50  ;;  %1322 = vmatpush.bf16.msrb.mxu3 %v1969_v54 }
  0xdf   :  { %1332 = vmatpush.bf16.msra.mxu0 %v2069_v20  ;;  %1345 = vmatpush.bf16.msra.mxu1 %v2073_v23  ;;  %v1868_v20 = vld [vmem:[#allocation4 + $0x10] sm:$0xf]  ;;  %v1913_v23 = vor.u32 %v2205_v14, %v1910_v15 }
  0xe0   :  { %v1869_v30 = vor.u32 %v2200_v21, %v1868_v20 }
  0xe1   :  { %1310 = vmatpush.bf16.msrb.mxu2 %v1933_v63  ;;  %1323 = vmatpush.bf16.msrb.mxu3 %v1937_v5 }
  0xe3   :  { %1333 = vmatpush.bf16.msra.mxu0 %v2037_v31  ;;  %1346 = vmatpush.bf16.msra.mxu1 %v2041_v34  ;;  %v1873_v31 = vor.u32 %v2196_v22, %v1870_v24 }
  0xe5   :  { %1311 = vmatpush.bf16.msrb.mxu2 %v1901_v17  ;;  %1324 = vmatpush.bf16.msrb.mxu3 %v1905_v18 }
  0xe7   :  { %1334 = vmatpush.bf16.msra.mxu0 %v2005_v43  ;;  %1347 = vmatpush.bf16.msra.mxu1 %v2009_v46  ;;  %v2551_v46 = vld [vmem:[%s2641_s6] sm:$0xff] }
  0xe8   :  { %v919_v47 = vperm.slane %v2551_v46, 2  ;;  %v920_v48 = vperm.slane %v2551_v46, 3  ;;  %v917_v53 = vperm.slane %v2551_v46, 0  ;;  %v918_v54 = vperm.slane %v2551_v46, 1 }
  0xe9   :  { %1312 = vmatpush.bf16.msrb.mxu2 %v1869_v30  ;;  %1325 = vmatpush.bf16.msrb.mxu3 %v1873_v31  ;;  %v923_v9 = vperm.slane %v2551_v46, 6  ;;  %v921_v20 = vperm.slane %v2551_v46, 4  ;;  %v922_v24 = vperm.slane %v2551_v46, 5 }
  0xeb   :  { %1335 = vmatpush.bf16.msra.mxu0 %v1973_v55  ;;  %1348 = vmatpush.bf16.msra.mxu1 %v1977_v60 }
  0xef   :  { %1336 = vmatpush.bf16.msra.mxu0 %v1941_v6  ;;  %1349 = vmatpush.bf16.msra.mxu1 %v1945_v10  ;;  %v924_v10 = vperm.slane %v2551_v46, 7 }
  0xf3   :  { %1337 = vmatpush.bf16.msra.mxu0 %v1909_v19  ;;  %1350 = vmatpush.bf16.msra.mxu1 %v1913_v23 }
  0xf7   :  { %1338 = vmatpush.bf16.msra.mxu0 %v1877_v32  ;;  %1351 = vmatpush.bf16.msra.mxu1 %v1881_v33 }
 0x157   :  { %v828_v34 = vpop.f32.mrf.mxu0  ;;  %v841_v35 = vpop.f32.mrf.mxu1 }
 0x158   :  { %v829_v36 = vadd.f32 %v828_v34, %v735_v28  ;;  %v842_v37 = vadd.f32 %v841_v35, %v736_v29 }
 0x15a   :  { %1518 = vst [vmem:[%s2644_s9 + $0x8] sm:$0xff] %v829_v36  ;;  %v845_v38 = vmul.f32 1.442695, %v842_v37 }
 0x15c   :  { %2265 = vpow2.f32 %v845_v38 }
 0x15f   :  { %v830_v39 = vpop.f32.mrf.mxu0  ;;  %v843_v40 = vpop.f32.mrf.mxu1 }
 0x162   :  { %v2266_v42 = vpop.eup %2265 }
 0x163   :  { %v848_v43 = vmul.f32 %v2266_v42, %v847_v41  ;;  %1519 = vst [vmem:[%s2644_s9 + $0x10] sm:$0xff] %v2266_v42 }
 0x165   :  { %v849_v44 = vadd.f32 %v848_v43, %v829_v36 }
 0x167   :  { %v850_v45 = vpack.c.bf16 %v849_v44, %v849_v44  ;;  %1517 = vst [vmem:[%s2644_s9] sm:$0xff] %v849_v44 }
 0x169   :  { %1261 = vmatmul.bf16.vlgmr.msra.gmra.mxu2 %v850_v45  ;;  %1274 = vmatmul.bf16.vlgmr.msra.gmra.mxu3 %v850_v45 }
 0x16a   :  { %1287 = vmatmul.bf16.vlgmr.msrb.gmra.mxu0 %v850_v45  ;;  %1300 = vmatmul.bf16.vlgmr.msrb.gmra.mxu1 %v850_v45 }
 0x179   :  { %1313 = vmatmul.bf16.vlgmr.msrb.gmra.mxu2 %v850_v45  ;;  %1326 = vmatmul.bf16.vlgmr.msrb.gmra.mxu3 %v850_v45 }
 0x17a   :  { %1339 = vmatmul.bf16.vlgmr.msra.gmra.mxu0 %v850_v45  ;;  %1352 = vmatmul.bf16.vlgmr.msra.gmra.mxu1 %v850_v45 }
 0x1e7   :  { %v1288_v49 = vpop.f32.mrf.mxu0  ;;  %v1301_v50 = vpop.f32.mrf.mxu1 }
 0x1e8   :  { %v1289_v51 = vadd.f32 %v1288_v49, %v919_v47  ;;  %v1302_v52 = vadd.f32 %v1301_v50, %v920_v48 }
 0x1ea   :  { %v2108_v55 = vmul.f32 -1.442695, %v1289_v51  ;;  %v2109_v57 = vmul.f32 -1.442695, %v1302_v52 }
 0x1ec   :  { %2267 = vpow2.f32 %v2108_v55  ;;  %v1262_v58 = vpop.f32.mrf.mxu2  ;;  %v1275_v59 = vpop.f32.mrf.mxu3 }
 0x1ed   :  { %2269 = vpow2.f32 %v2109_v57  ;;  %v1263_v60 = vadd.f32 %v1262_v58, %v917_v53  ;;  %v1276_v61 = vadd.f32 %v1275_v59, %v918_v54 }
 0x1ef   :  { %v2106_v56 = vmul.f32 -1.442695, %v1263_v60  ;;  %v2107_v62 = vmul.f32 -1.442695, %v1276_v61  ;;  %v1290_v63 = vpop.f32.mrf.mxu0  ;;  %v1303_v2 = vpop.f32.mrf.mxu1 }
 0x1f1   :  { %2271 = vpow2.f32 %v2106_v56 }
 0x1f2   :  { %v2268_v3 = vpop.eup %2267  ;;  %2273 = vpow2.f32 %v2107_v62 }
 0x1f3   :  { %v2270_v4 = vpop.eup %2269  ;;  %v1383_v5 = vadd.f32 1.0, %v2268_v3 }
 0x1f4   :  { %v2557_v6 = vadd.f32 1.0, %v2270_v4  ;;  %v1264_v7 = vpop.f32.mrf.mxu2  ;;  %v1277_v8 = vpop.f32.mrf.mxu3 }
 0x1f5   :  { %2275 = vrcp.f32 %v1383_v5  ;;  %v1428_v15 = vand.u32 2147483647, %v1383_v5  ;;  %v1430_v16 = vand.u32 2147483648, %v1383_v5  ;;  %vm1424_vm0 = vweird.f32 %v1383_v5 }
 0x1f6   :  { %2277 = vrcp.f32 %v2557_v6  ;;  %v1443_v22 = vand.u32 2147483647, %v2557_v6  ;;  %v1445_v23 = vand.u32 2147483648, %v2557_v6  ;;  %vm1439_vm2 = vweird.f32 %v2557_v6 }
 0x1f7   :  { %v2272_v11 = vpop.eup %2271  ;;  %v1340_v12 = vpop.f32.mrf.mxu0  ;;  %vm2572_vm1 = vcmp.eq.f32.partialorder %v1428_v15, 8.507059e+37  ;;  %v1431_v29 = vor.u32 1.1754944e-38, %v1430_v16 }
 0x1f8   :  { %v1353_v0 = vpop.f32.mrf.mxu1  ;;  %v2274_v13 = vpop.eup %2273  ;;  %v2562_v14 = vadd.f32 1.0, %v2272_v11  ;;  %v1341_v18 = vadd.f32 %v1340_v12, %v923_v9  ;;  %vm2578_vm3 = vcmp.eq.f32.partialorder %v1443_v22, 8.507059e+37  ;;  %v1446_v37 = vor.u32 1.1754944e-38, %v1445_v23 }
 0x1f9   :  { %v2564_v17 = vadd.f32 1.0, %v2274_v13  ;;  %v1354_v19 = vadd.f32 %v1353_v0, %v924_v10 }
 0x1fa   :  { %2279 = vrcp.f32 %v2562_v14  ;;  %v2112_v32 = vmul.f32 -1.442695, %v1341_v18  ;;  %v1398_v48 = vand.u32 2147483647, %v2562_v14  ;;  %v1400_v49 = vand.u32 2147483648, %v2562_v14 }
 0x1fb   :  { %v2276_v21 = vpop.eup %2275  ;;  %2281 = vrcp.f32 %v2564_v17  ;;  %v2113_v33 = vmul.f32 -1.442695, %v1354_v19  ;;  %v1415_v57 = vand.u32 2147483648, %v2564_v17  ;;  %v1413_v3 = vand.u32 2147483647, %v2564_v17 }
 0x1fc   :  { %v2278_v25 = vpop.eup %2277  ;;  %v1420_v1 = vmul.f32 %v2276_v21, %v1383_v5  ;;  %v1314_v26 = vpop.f32.mrf.mxu2  ;;  %vm1425_vm4 = vweird.f32 %v2276_v21  ;;  %2283 = vpow2.f32 %v2112_v32  ;;  %vm1394_vm10 = vweird.f32 %v2562_v14 }
 0x1fd   :  { %v1327_v27 = vpop.f32.mrf.mxu3  ;;  %v1435_v30 = vmul.f32 %v2278_v25, %v2557_v6  ;;  %v1315_v34 = vadd.f32 %v1314_v26, %v921_v20  ;;  %vm1440_vm5 = vweird.f32 %v2278_v25  ;;  %2285 = vpow2.f32 %v2113_v33  ;;  %vm1426_vm6 = vmor %vm1424_vm0, %vm1425_vm4 }
 0x1fe   :  { %v1421_v31 = vsub.f32 1.0, %v1420_v1  ;;  %v1328_v38 = vadd.f32 %v1327_v27, %v922_v24  ;;  %vm1441_vm7 = vmor %vm1439_vm2, %vm1440_vm5  ;;  %v1401_v7 = vor.u32 1.1754944e-38, %v1400_v49  ;;  %vm1409_vm12 = vweird.f32 %v2564_v17 }
 0x1ff   :  { %v1436_v35 = vsub.f32 1.0, %v1435_v30  ;;  %v1342_v39 = vpop.f32.mrf.mxu0  ;;  %v2110_v43 = vmul.f32 -1.442695, %v1315_v34  ;;  %vm1399_vm13 = vcmp.eq.f32.partialorder %v1398_v48, 8.507059e+37  ;;  %v1416_v12 = vor.u32 1.1754944e-38, %v1415_v57 }
 0x200   :  { %v1355_v40 = vpop.f32.mrf.mxu1  ;;  %v2280_v41 = vpop.eup %2279  ;;  %v1422_v42 = vmul.f32 %v2276_v21, %v1421_v31  ;;  %v2111_v53 = vmul.f32 -1.442695, %v1328_v38  ;;  %vm1414_vm15 = vcmp.eq.f32.partialorder %v1413_v3, 8.507059e+37 }
 0x201   :  { %v2282_v44 = vpop.eup %2281  ;;  %v1437_v45 = vmul.f32 %v2278_v25, %v1436_v35  ;;  %v1390_v46 = vmul.f32 %v2280_v41, %v2562_v14  ;;  %2287 = vpow2.f32 %v2110_v43  ;;  %vm1395_vm8 = vweird.f32 %v2280_v41 }
 0x202   :  { %v1423_v47 = vadd.f32 %v2276_v21, %v1422_v42  ;;  %v1405_v50 = vmul.f32 %v2282_v44, %v2564_v17  ;;  %2289 = vpow2.f32 %v2111_v53  ;;  %v2284_v62 = vpop.eup %2283  ;;  %vm1410_vm9 = vweird.f32 %v2282_v44  ;;  %vm1396_vm11 = vmor %vm1394_vm10, %vm1395_vm8 }
 0x203   :  { %v1438_v51 = vadd.f32 %v2278_v25, %v1437_v45  ;;  %v1391_v52 = vsub.f32 1.0, %v1390_v46  ;;  %v2286_v4 = vpop.eup %2285  ;;  %v1387_v6 = vadd.f32 1.0, %v2284_v62  ;;  %vm1411_vm14 = vmor %vm1409_vm12, %vm1410_vm9 }
 0x204   :  { %v1427_v54 = vsel %vm1426_vm6, %v2276_v21, %v1423_v47  ;;  %v1406_v55 = vsub.f32 1.0, %v1405_v50  ;;  %v1316_v58 = vpop.f32.mrf.mxu2  ;;  %v1388_v9 = vadd.f32 1.0, %v2286_v4 }
 0x205   :  { %v1329_v59 = vpop.f32.mrf.mxu3  ;;  %v1432_v60 = vsel %vm2572_vm1, %v1431_v29, %v1427_v54  ;;  %v1442_v61 = vsel %vm1441_vm7, %v2278_v25, %v1438_v51  ;;  %v1392_v56 = vmul.f32 %v2280_v41, %v1391_v52  ;;  %2291 = vrcp.f32 %v1387_v6 }
 0x206   :  { %1511 = vst [vmem:[%s2643_s8 + $0x10] sm:$0xff] %v1432_v60  ;;  %v1447_v63 = vsel %vm2578_vm3, %v1446_v37, %v1442_v61  ;;  %v1407_v2 = vmul.f32 %v2282_v44, %v1406_v55  ;;  %2293 = vrcp.f32 %v1388_v9  ;;  %v1488_v21 = vand.u32 2147483647, %v1387_v6 }
 0x207   :  { %1512 = vst [vmem:[%s2643_s8 + $0x18] sm:$0xff] %v1447_v63  ;;  %v1393_v5 = vadd.f32 %v2280_v41, %v1392_v56  ;;  %v2288_v10 = vpop.eup %2287  ;;  %v1490_v24 = vand.u32 2147483648, %v1387_v6  ;;  %v1503_v25 = vand.u32 2147483647, %v1388_v9  ;;  %v1505_v26 = vand.u32 2147483648, %v1388_v9 }
 0x208   :  { %v1408_v8 = vadd.f32 %v2282_v44, %v1407_v2  ;;  %v2290_v14 = vpop.eup %2289  ;;  %v1385_v16 = vadd.f32 1.0, %v2288_v10  ;;  %vm1484_vm0 = vweird.f32 %v1387_v6  ;;  %vm2611_vm2 = vcmp.eq.f32.partialorder %v1488_v21, 8.507059e+37 }
 0x209   :  { %v1397_v11 = vsel %vm1396_vm11, %v2280_v41, %v1393_v5  ;;  %v1386_v17 = vadd.f32 1.0, %v2290_v14  ;;  %vm1499_vm3 = vweird.f32 %v1388_v9  ;;  %v1491_v34 = vor.u32 1.1754944e-38, %v1490_v24 }
 0x20a   :  { %v1402_v0 = vsel %vm1399_vm13, %v1401_v7, %v1397_v11  ;;  %v1412_v13 = vsel %vm1411_vm14, %v2282_v44, %v1408_v8  ;;  %2295 = vrcp.f32 %v1385_v16  ;;  %vm2615_vm5 = vcmp.eq.f32.partialorder %v1503_v25, 8.507059e+37 }
 0x20b   :  { %1509 = vst [vmem:[%s2643_s8] sm:$0xff] %v1402_v0  ;;  %v1417_v15 = vsel %vm1414_vm15, %v1416_v12, %v1412_v13  ;;  %v2292_v18 = vpop.eup %2291  ;;  %2297 = vrcp.f32 %v1386_v17  ;;  %v1506_v38 = vor.u32 1.1754944e-38, %v1505_v26  ;;  %v1458_v40 = vand.u32 2147483647, %v1385_v16 }
 0x20c   :  { %1510 = vst [vmem:[%s2643_s8 + $0x8] sm:$0xff] %v1417_v15  ;;  %v2294_v19 = vpop.eup %2293  ;;  %v1480_v20 = vmul.f32 %v2292_v18, %v1387_v6  ;;  %vm1485_vm1 = vweird.f32 %v2292_v18  ;;  %v1460_v42 = vand.u32 2147483648, %v1385_v16  ;;  %v1475_v44 = vand.u32 2147483648, %v1386_v17 }
 0x20d   :  { %v1495_v22 = vmul.f32 %v2294_v19, %v1388_v9  ;;  %vm1500_vm4 = vweird.f32 %v2294_v19  ;;  %vm1486_vm6 = vmor %vm1484_vm0, %vm1485_vm1  ;;  %v1473_v50 = vand.u32 2147483647, %v1386_v17  ;;  %vm1454_vm10 = vweird.f32 %v1385_v16 }
 0x20e   :  { %v1481_v23 = vsub.f32 1.0, %v1480_v20  ;;  %vm1501_vm7 = vmor %vm1499_vm3, %vm1500_vm4  ;;  %v1461_v52 = vor.u32 1.1754944e-38, %v1460_v42  ;;  %vm1469_vm12 = vweird.f32 %v1386_v17  ;;  %vm1459_vm13 = vcmp.eq.f32.partialorder %v1458_v40, 8.507059e+37 }
 0x20f   :  { %v1496_v1 = vsub.f32 1.0, %v1495_v22  ;;  %v1476_v55 = vor.u32 1.1754944e-38, %v1475_v44  ;;  %vm1474_vm15 = vcmp.eq.f32.partialorder %v1473_v50, 8.507059e+37 }
 0x210   :  { %v2296_v27 = vpop.eup %2295  ;;  %v1482_v28 = vmul.f32 %v2292_v18, %v1481_v23 }
 0x211   :  { %v2298_v30 = vpop.eup %2297  ;;  %v1497_v31 = vmul.f32 %v2294_v19, %v1496_v1  ;;  %v1450_v32 = vmul.f32 %v2296_v27, %v1385_v16  ;;  %vm1455_vm8 = vweird.f32 %v2296_v27 }
 0x212   :  { %v1483_v33 = vadd.f32 %v2292_v18, %v1482_v28  ;;  %v1465_v36 = vmul.f32 %v2298_v30, %v1386_v17  ;;  %vm1470_vm9 = vweird.f32 %v2298_v30  ;;  %vm1456_vm11 = vmor %vm1454_vm10, %vm1455_vm8 }
 0x213   :  { %v1498_v37 = vadd.f32 %v2294_v19, %v1497_v31  ;;  %v1451_v39 = vsub.f32 1.0, %v1450_v32  ;;  %vm1471_vm14 = vmor %vm1469_vm12, %vm1470_vm9 }
 0x214   :  { %v1487_v41 = vsel %vm1486_vm6, %v2292_v18, %v1483_v33  ;;  %v1466_v43 = vsub.f32 1.0, %v1465_v36 }
 0x215   :  { %v1492_v45 = vsel %vm2611_vm2, %v1491_v34, %v1487_v41  ;;  %v1502_v46 = vsel %vm1501_vm7, %v2294_v19, %v1498_v37  ;;  %v1452_v47 = vmul.f32 %v2296_v27, %v1451_v39 }
 0x216   :  { %1515 = vst [vmem:[%s2643_s8 + $0x30] sm:$0xff] %v1492_v45  ;;  %v1507_v48 = vsel %vm2615_vm5, %v1506_v38, %v1502_v46  ;;  %v1467_v49 = vmul.f32 %v2298_v30, %v1466_v43 }
 0x217   :  { %1516 = vst [vmem:[%s2643_s8 + $0x38] sm:$0xff] %v1507_v48  ;;  %v1453_v51 = vadd.f32 %v2296_v27, %v1452_v47 }
 0x218   :  { %v1468_v53 = vadd.f32 %v2298_v30, %v1467_v49 }
 0x219   :  { %v1457_v54 = vsel %vm1456_vm11, %v2296_v27, %v1453_v51 }
 0x21a   :  { %v1462_v57 = vsel %vm1459_vm13, %v1461_v52, %v1457_v54  ;;  %v1472_v58 = vsel %vm1471_vm14, %v2298_v30, %v1468_v53 }
 0x21b   :  { %1513 = vst [vmem:[%s2643_s8 + $0x20] sm:$0xff] %v1462_v57  ;;  %v1477_v59 = vsel %vm1474_vm15, %v1476_v55, %v1472_v58 }
 0x21c   :  { %1514 = vst [vmem:[%s2643_s8 + $0x28] sm:$0xff] %v1477_v59 }
 0x21d   :  { %1528 = vsyncpa [#allocation3], 1 }
 0x21e   :  { %1529 = vsyncpa [#allocation5], 1 }

</bundles_post_ra>
